<compile_context>
chip_gen: v6e
topology: v6e:2x2x1
jax: 0.10.0
libtpu: 0.0.40
codegen_flags: <defaults>
</compile_context>

<pallas_src>
import functools

import jax
import jax.numpy as jnp
from jax.experimental import pallas as pl
from jax.experimental.pallas import tpu as pltpu


def _round_up(n, m):
    return ((n + m - 1) // m) * m


def _vmem_capacity_bytes():
    """Physical VMEM per core; 128 MiB fallback (v5e/v6e) off-TPU/interpret."""
    try:
        info = pltpu.get_tpu_info()
        cap = getattr(info, "vmem_capacity_bytes", None)
        if cap:
            return int(cap)
    except Exception:
        pass
    return 128 << 20


def _vmem_need(tm, tn, H, xbytes, obytes, wbytes, grid_n):
    return (2 * tm * H * xbytes            # x row tile, double-buffered
            + 2 * tm * tn * obytes         # output tile, double-buffered
            + 2 * H * tn * wbytes          # weight column tile, double-buffered
            + 2 * tn * 4 + 4 * H * 4       # bias + gamma + beta
            + (tm * H * wbytes if grid_n > 1 else 0)   # cached normed tile
            + (2 << 20))                   # compiler-internal headroom


def _sublayer_kernel(seed_ref, x_ref, gamma_ref, beta_ref, w_ref, b_ref,
                     o_ref, *scratch, eps, p_drop, train, matmul_dtype,
                     tm, tn, grid_n):
    """One (tm, H) row tile -> one (tm, tn) output-column tile."""
    h = x_ref.shape[-1]

    def layernorm(xf):
        # Unbiased std like torch.Tensor.std; divide -> EUP reciprocal.
        mean = jnp.mean(xf, axis=-1, keepdims=True)
        diff = xf - mean
        var = jnp.sum(diff * diff, axis=-1, keepdims=True) * (1.0 / (h - 1))
        inv_std = pl.reciprocal(jnp.sqrt(var) + eps, approx=True)   # EUP slot
        return (diff * inv_std) * gamma_ref[...] + beta_ref[...]

    if grid_n == 1:
        xf = x_ref[...].astype(jnp.float32)
        lhs = layernorm(xf).astype(matmul_dtype)
        x_res = xf
    else:
        # LayerNorm once per row tile; reuse the bf16 scratch for every j.
        normed_sc = scratch[0]

        @pl.when(pl.program_id(1) == 0)
        def _():
            normed_sc[...] = layernorm(
                x_ref[...].astype(jnp.float32)).astype(matmul_dtype)

        lhs = normed_sc[...]
        col = pl.multiple_of(pl.program_id(1) * tn, 128)
        x_res = x_ref[:, pl.ds(col, tn)].astype(jnp.float32)

    # ---- sublayer: Linear(H -> tn) on the MXU (bf16 operands, f32 acc) ----
    y = jnp.dot(lhs, w_ref[...], preferred_element_type=jnp.float32)
    y = y + b_ref[...].astype(jnp.float32)

    # ---- dropout (inverted scaling); identity when train=False ------------
    # TODO(synk): the mask is a counter-based hash of (seed, row, col), so it
    # is Bernoulli(1-p) but not bit-identical to torch.nn.Dropout's RNG.
    if train and p_drop > 0.0:
        thr = jnp.uint32(min(int(p_drop * 4294967296.0), 4294967295))
        row0 = (pl.program_id(0) * tm).astype(jnp.uint32)
        col0 = (pl.program_id(1) * tn).astype(jnp.uint32)
        r = jax.lax.broadcasted_iota(jnp.uint32, y.shape, 0) + row0
        c = jax.lax.broadcasted_iota(jnp.uint32, y.shape, 1) + col0
        hsh = ((r * jnp.uint32(0x85EBCA6B))
               ^ (c * jnp.uint32(0xC2B2AE35))
               ^ seed_ref[0].astype(jnp.uint32))
        # lowbias32 finalizer: good avalanche, integer-only (no u32->f32).
        hsh = hsh ^ (hsh >> 16)
        hsh = hsh * jnp.uint32(0x7FEB352D)
        hsh = hsh ^ (hsh >> 15)
        hsh = hsh * jnp.uint32(0x846CA68B)
        hsh = hsh ^ (hsh >> 16)
        y = jnp.where(hsh >= thr, y * (1.0 / (1.0 - p_drop)), 0.0)

    # ---- residual connection ----------------------------------------------
    o_ref[...] = (x_res + y).astype(o_ref.dtype)


def sublayer_connection(x, gamma, beta, w, b, *, dropout=0.1, train=False,
                        seed=0, eps=1e-6, tm=None, tn=None,
                        matmul_dtype=jnp.bfloat16):
    """x: (B, S, H). Returns x + dropout(Linear(LayerNorm(x)))."""
    B, S, H = x.shape
    rows = B * S
    xbytes = obytes = jnp.dtype(x.dtype).itemsize
    wbytes = jnp.dtype(matmul_dtype).itemsize

    # TODO(synk): pass a persistently-stored bf16 weight to avoid this per-call
    # HBM round trip; the example below does, so this cast is a no-op there.
    if w.dtype != matmul_dtype:
        w = w.astype(matmul_dtype)
    if gamma.ndim == 1:
        gamma = gamma[None, :]
    if beta.ndim == 1:
        beta = beta[None, :]
    if b.ndim == 1:
        b = b[None, :]

    budget = (_vmem_capacity_bytes() * 3) // 4   # ~96 MiB v5e/v6e, ~48 MiB v7x
    sub = 8 if xbytes >= 4 else 16

    # ---- choose output-column tile (prefer fully-resident weight) ---------
    if tn is None:
        cands = [H] + sorted((t for t in range(128, H, 128) if H % t == 0),
                             reverse=True)
        tn = cands[-1]
        for cand in cands:
            if _vmem_need(256, cand, H, xbytes, obytes, wbytes,
                          H // cand) <= budget:
                tn = cand
                break
    assert tn == H or (H % tn == 0 and tn % 128 == 0), \
        "tn must equal H, or divide H and be a multiple of 128"
    grid_n = H // tn
    # TODO(synk): H not a multiple of 128 runs with partial-lane tiles; padding
    # H would change the LayerNorm statistics so it is not done here.

    # ---- choose row tile from the VMEM budget (~4 MiB x tile target) ------
    rows_min = _round_up(rows, sub)
    if tm is None:
        tm_eff = min((4 << 20) // max(H * xbytes, 1), 2048, rows_min)
        tm_eff = max(_round_up(tm_eff, sub), sub)
        while tm_eff > sub and _vmem_need(tm_eff, tn, H, xbytes, obytes,
                                          wbytes, grid_n) > budget:
            tm_eff = max(_round_up(tm_eff // 2, sub), sub)
    else:
        tm_eff = max(_round_up(min(tm, rows_min), sub), sub)

    rows_p = _round_up(rows, tm_eff)
    grid_m = rows_p // tm_eff
    # Guarantee >=2 grid points so both v7x TensorCores get work when possible.
    while grid_m * grid_n < 2 and tm_eff > sub:
        tm_eff = max(_round_up(tm_eff // 2, sub), sub)
        rows_p = _round_up(rows, tm_eff)
        grid_m = rows_p // tm_eff

    x2 = x.reshape(rows, H)
    if rows_p != rows:
        x2 = jnp.pad(x2, ((0, rows_p - rows), (0, 0)))
    seed_arr = jnp.asarray([seed], jnp.int32)     # scalar-prefetch (SMEM)

    kernel = functools.partial(
        _sublayer_kernel, eps=float(eps), p_drop=float(dropout),
        train=bool(train), matmul_dtype=matmul_dtype,
        tm=tm_eff, tn=tn, grid_n=grid_n)

    vmem_needed = _vmem_need(tm_eff, tn, H, xbytes, obytes, wbytes, grid_n)
    vmem_limit = int(min(budget, max(vmem_needed, 32 << 20)))

    # Weight is re-streamed once per row tile when column-tiled.
    w_stream = (grid_m if grid_n > 1 else 1) * H * H * wbytes
    cost = pl.CostEstimate(
        flops=int(2 * rows_p * H * H),
        transcendentals=int(2 * rows_p),          # sqrt + reciprocal per row
        bytes_accessed=int(rows_p * H * xbytes + rows_p * H * obytes
                           + w_stream + 4 * H * 4))

    scratch_shapes = ([pltpu.VMEM((tm_eff, H), matmul_dtype)]
                      if grid_n > 1 else [])

    grid_spec = pltpu.PrefetchScalarGridSpec(
        num_scalar_prefetch=1,
        grid=(grid_m, grid_n),
        in_specs=[
            pl.BlockSpec((tm_eff, H), lambda i, j, s: (i, 0)),    # x rows
            pl.BlockSpec((1, H), lambda i, j, s: (0, 0)),         # gamma
            pl.BlockSpec((1, H), lambda i, j, s: (0, 0)),         # beta
            pl.BlockSpec((H, tn), lambda i, j, s: (0, j)),        # weight
            pl.BlockSpec((1, tn), lambda i, j, s: (0, j)),        # bias
        ],
        out_specs=pl.BlockSpec((tm_eff, tn), lambda i, j, s: (i, j)),
        scratch_shapes=scratch_shapes,
    )

    out2 = pl.pallas_call(
        kernel,
        out_shape=jax.ShapeDtypeStruct((rows_p, H), x.dtype),
        grid_spec=grid_spec,
        compiler_params=pltpu.CompilerParams(
            dimension_semantics=("parallel", "arbitrary"),
            vmem_limit_bytes=vmem_limit),
        cost_estimate=cost,
    )(seed_arr, x2, gamma, beta, w, b)

    if rows_p != rows:
        out2 = out2[:rows]
    return out2.reshape(B, S, H)


def _reference(x, gamma, beta, w, b, eps=1e-6):
    xf = x.astype(jnp.float32)
    mean = jnp.mean(xf, axis=-1, keepdims=True)
    std = jnp.std(xf, axis=-1, keepdims=True, ddof=1)
    normed = gamma * (xf - mean) / (std + eps) + beta
    y = normed @ w.astype(jnp.float32) + b
    return (xf + y).astype(x.dtype)


if __name__ == "__main__":
    key = jax.random.PRNGKey(0)
    ks = jax.random.split(key, 10)

    # ---- Config A: lane-dense hidden (H = 128), weight fully resident -----
    B, S, H = 2, 8, 128
    x = jax.random.normal(ks[0], (B, S, H), dtype=jnp.float32)
    gamma = 1.0 + 0.1 * jax.random.normal(ks[1], (1, H), dtype=jnp.float32)
    beta = 0.1 * jax.random.normal(ks[2], (1, H), dtype=jnp.float32)
    # Weight stored persistently in bf16 (no per-call cast in the wrapper).
    w = (0.05 * jax.random.normal(ks[3], (H, H), dtype=jnp.float32)
         ).astype(jnp.bfloat16)
    b = 0.05 * jax.random.normal(ks[4], (1, H), dtype=jnp.float32)

    out = sublayer_connection(x, gamma, beta, w, b, dropout=0.1, train=False)
    out = jax.block_until_ready(out)
    ref = _reference(x, gamma, beta, w, b)
    assert out.shape == (B, S, H)
    # Tolerance covers bf16 MXU operands + approximate EUP reciprocal.
    assert jnp.allclose(out, ref, atol=3e-2, rtol=3e-2), (
        "eval-mode mismatch vs reference, max|diff|="
        f"{float(jnp.max(jnp.abs(out - ref)))}")

    # ---- Config B: column-tiled weight + normed-scratch reuse + row pad ---
    B2, S2, H2 = 2, 9, 256
    x2 = jax.random.normal(ks[5], (B2, S2, H2), dtype=jnp.float32)
    gamma2 = 1.0 + 0.1 * jax.random.normal(ks[6], (1, H2), dtype=jnp.float32)
    beta2 = 0.1 * jax.random.normal(ks[7], (1, H2), dtype=jnp.float32)
    w2 = (0.05 * jax.random.normal(ks[8], (H2, H2), dtype=jnp.float32)
          ).astype(jnp.bfloat16)
    b2 = 0.05 * jax.random.normal(ks[9], (1, H2), dtype=jnp.float32)

    out2 = sublayer_connection(x2, gamma2, beta2, w2, b2, dropout=0.1,
                               train=False, tn=128)
    out2 = jax.block_until_ready(out2)
    ref2 = _reference(x2, gamma2, beta2, w2, b2)
    assert out2.shape == (B2, S2, H2)
    assert jnp.allclose(out2, ref2, atol=3e-2, rtol=3e-2), (
        "column-tiled mismatch vs reference, max|diff|="
        f"{float(jnp.max(jnp.abs(out2 - ref2)))}")

    # ---- Train mode: dropout path runs, ~10% of entries pass through ------
    out_tr = sublayer_connection(x, gamma, beta, w, b, dropout=0.1,
                                 train=True, seed=123)
    out_tr = jax.block_until_ready(out_tr)
    assert out_tr.shape == (B, S, H)
    assert bool(jnp.all(jnp.isfinite(out_tr)))
    dropped_frac = float(jnp.mean((out_tr == x).astype(jnp.float32)))
    assert 0.02 <= dropped_frac <= 0.25, f"unexpected drop rate {dropped_frac}"

    print("KERNEL_OK")
</pallas_src>

<mosaic_0001>
module attributes {stable_mosaic.version = 11 : i64} {
  func.func @_sublayer_kernel(%arg0: i32, %arg1: i32, %arg2: memref<1xi32, #tpu.memory_space<smem>>, %arg3: memref<8x128xf32, #tpu.memory_space<vmem>>, %arg4: memref<1x128xf32, #tpu.memory_space<vmem>>, %arg5: memref<1x128xf32, #tpu.memory_space<vmem>>, %arg6: memref<128x128xbf16, #tpu.memory_space<vmem>>, %arg7: memref<1x128xf32, #tpu.memory_space<vmem>>, %arg8: memref<8x128xf32, #tpu.memory_space<vmem>>) attributes {dimension_semantics = [#tpu.dimension_semantics<parallel>, #tpu.dimension_semantics<arbitrary>], iteration_bounds = array<i64: 2, 1>, scalar_prefetch = 1 : i64, scratch_operands = 0 : i64, tpu.core_type = #tpu.core_type<tc>, window_params = [{transform_indices = @transform_0, window_bounds = array<i64: 8, 128>}, {pipeline_mode = #tpu.pipeline_mode<synchronous>, transform_indices = @transform_1, window_bounds = array<i64: 1, 128>}, {pipeline_mode = #tpu.pipeline_mode<synchronous>, transform_indices = @transform_2, window_bounds = array<i64: 1, 128>}, {transform_indices = @transform_3, window_bounds = array<i64: 128, 128>}, {transform_indices = @transform_4, window_bounds = array<i64: 1, 128>}, {transform_indices = @transform_5, window_bounds = array<i64: 8, 128>}]} {
    %c0 = arith.constant 0 : index
    %c0_0 = arith.constant 0 : index
    %0 = vector.load %arg3[%c0, %c0_0] : memref<8x128xf32, #tpu.memory_space<vmem>>, vector<8x128xf32>
    %cst = arith.constant dense<0.000000e+00> : vector<8xf32>
    %1 = vector.multi_reduction <add>, %0, %cst [1] : vector<8x128xf32> to vector<8xf32>
    %2 = vector.shape_cast %1 : vector<8xf32> to vector<8x1xf32>
    %cst_1 = arith.constant 1.280000e+02 : f32
    %3 = vector.broadcast %cst_1 : f32 to vector<8x1xf32>
    %4 = arith.divf %2, %3 : vector<8x1xf32>
    %5 = vector.broadcast %4 : vector<8x1xf32> to vector<8x128xf32>
    %6 = arith.subf %0, %5 : vector<8x128xf32>
    %7 = arith.mulf %6, %6 : vector<8x128xf32>
    %cst_2 = arith.constant dense<0.000000e+00> : vector<8xf32>
    %8 = vector.multi_reduction <add>, %7, %cst_2 [1] : vector<8x128xf32> to vector<8xf32>
    %9 = vector.shape_cast %8 : vector<8xf32> to vector<8x1xf32>
    %cst_3 = arith.constant 0.00787401571 : f32
    %10 = vector.broadcast %cst_3 : f32 to vector<8x1xf32>
    %11 = arith.mulf %9, %10 : vector<8x1xf32>
    %12 = math.sqrt %11 : vector<8x1xf32>
    %cst_4 = arith.constant 9.99999997E-7 : f32
    %13 = vector.broadcast %cst_4 : f32 to vector<8x1xf32>
    %14 = arith.addf %12, %13 : vector<8x1xf32>
    %15 = tpu.reciprocal %14 {approx = true} : vector<8x1xf32> -> vector<8x1xf32>
    %16 = vector.broadcast %15 : vector<8x1xf32> to vector<8x128xf32>
    %17 = arith.mulf %6, %16 : vector<8x128xf32>
    %c0_5 = arith.constant 0 : index
    %c0_6 = arith.constant 0 : index
    %18 = vector.load %arg4[%c0_5, %c0_6] : memref<1x128xf32, #tpu.memory_space<vmem>>, vector<1x128xf32>
    %19 = vector.broadcast %18 : vector<1x128xf32> to vector<8x128xf32>
    %20 = arith.mulf %17, %19 : vector<8x128xf32>
    %c0_7 = arith.constant 0 : index
    %c0_8 = arith.constant 0 : index
    %21 = vector.load %arg5[%c0_7, %c0_8] : memref<1x128xf32, #tpu.memory_space<vmem>>, vector<1x128xf32>
    %22 = vector.broadcast %21 : vector<1x128xf32> to vector<8x128xf32>
    %23 = arith.addf %20, %22 : vector<8x128xf32>
    %24 = arith.truncf %23 : vector<8x128xf32> to vector<8x128xbf16>
    %c0_9 = arith.constant 0 : index
    %c0_10 = arith.constant 0 : index
    %25 = vector.load %arg6[%c0_9, %c0_10] : memref<128x128xbf16, #tpu.memory_space<vmem>>, vector<128x128xbf16>
    %cst_11 = arith.constant dense<0.000000e+00> : vector<8x128xf32>
    %26 = tpu.matmul %24, %25, %cst_11 {dimension_numbers = #tpu.dot_dimension_numbers<[1], [0], [0], [1], [0, 0, 1, 1], [], []>} : vector<8x128xbf16>, vector<128x128xbf16>, vector<8x128xf32> -> vector<8x128xf32>
    %c0_12 = arith.constant 0 : index
    %c0_13 = arith.constant 0 : index
    %27 = vector.load %arg7[%c0_12, %c0_13] : memref<1x128xf32, #tpu.memory_space<vmem>>, vector<1x128xf32>
    %28 = vector.broadcast %27 : vector<1x128xf32> to vector<8x128xf32>
    %29 = arith.addf %26, %28 : vector<8x128xf32>
    %30 = arith.addf %0, %29 : vector<8x128xf32>
    %c0_14 = arith.constant 0 : index
    %c0_15 = arith.constant 0 : index
    %31 = vector.load %arg8[%c0_14, %c0_15] : memref<8x128xf32, #tpu.memory_space<vmem>>, vector<8x128xf32>
    tpu.vector_store %arg8[%c0_14, %c0_15], %30 {strides = array<i32>} : memref<8x128xf32, #tpu.memory_space<vmem>>, vector<8x128xf32>,
    return
  }
  func.func @transform_0(%arg0: i32, %arg1: i32, %arg2: memref<1xi32, #tpu.memory_space<smem>>) -> (i32, i32) {
    %c0_i32 = arith.constant 0 : i32
    %c0_i32_0 = arith.constant 0 : i32
    return %arg0, %c0_i32 : i32, i32
  }
  func.func @transform_1(%arg0: i32, %arg1: i32, %arg2: memref<1xi32, #tpu.memory_space<smem>>) -> (i32, i32) {
    %c0_i32 = arith.constant 0 : i32
    %c0_i32_0 = arith.constant 0 : i32
    %c0_i32_1 = arith.constant 0 : i32
    return %c0_i32, %c0_i32_0 : i32, i32
  }
  func.func @transform_2(%arg0: i32, %arg1: i32, %arg2: memref<1xi32, #tpu.memory_space<smem>>) -> (i32, i32) {
    %c0_i32 = arith.constant 0 : i32
    %c0_i32_0 = arith.constant 0 : i32
    %c0_i32_1 = arith.constant 0 : i32
    return %c0_i32, %c0_i32_0 : i32, i32
  }
  func.func @transform_3(%arg0: i32, %arg1: i32, %arg2: memref<1xi32, #tpu.memory_space<smem>>) -> (i32, i32) {
    %c0_i32 = arith.constant 0 : i32
    %c0_i32_0 = arith.constant 0 : i32
    return %c0_i32, %arg1 : i32, i32
  }
  func.func @transform_4(%arg0: i32, %arg1: i32, %arg2: memref<1xi32, #tpu.memory_space<smem>>) -> (i32, i32) {
    %c0_i32 = arith.constant 0 : i32
    %c0_i32_0 = arith.constant 0 : i32
    return %c0_i32, %arg1 : i32, i32
  }
  func.func @transform_5(%arg0: i32, %arg1: i32, %arg2: memref<1xi32, #tpu.memory_space<smem>>) -> (i32, i32) {
    %c0_i32 = arith.constant 0 : i32
    return %arg0, %arg1 : i32, i32
  }
}

</mosaic_0001>

<bundles_post_ra>
// kernel: tpu_custom_call.1
= control target key start
LH: loop header
LB: loop body
LE: loop exit
PB: predicated region body
PF: predicated region fallthrough
CT: control target
= control target key end

     0   :  { %s1080_s0 = inlined_call_operand.<no memory space> [shape: s32[1], index: 0, kind: input, shape index: {}]   ;;  %s1081_s1 = inlined_call_operand.hbm [shape: f32[16,128], index: 1, kind: input, shape index: {}]   ;;  %s1082_s2 = inlined_call_operand.vmem [shape: f32[1,128], index: 2, kind: input, shape index: {}]   ;;  %s1083_s3 = inlined_call_operand.vmem [shape: f32[1,128], index: 3, kind: input, shape index: {}]   ;;  %s1084_s4 = inlined_call_operand.hbm [shape: bf16[128,128], index: 4, kind: input, shape index: {}]   ;;  %s1085_s5 = inlined_call_operand.vmem [shape: f32[1,128], index: 5, kind: input, shape index: {}]   ;;  %s1086_s6 = inlined_call_operand.hbm [shape: f32[16,128], index: 6, kind: output, shape index: {}]  }
   0x1   :  { %1089 = sst [smem:[#allocation14_spill]] %s1084_s4 }
   0x2   :  { %12 = vsyncpa [#allocation5], 0 }
   0x3   :  { %14 = vsyncpa [#allocation5 + $0x1], 0 }
   0x4   :  { %15 = vsyncpa [#allocation8], 0 }
   0x5   :  { %16 = vsyncpa [#allocation6], 0 }
   0x6   :  { %18 = vsyncpa [#allocation6 + $0x1], 0  ;;  %s888_s0 = smov 0   ;;  %s890_s21 = smov 0  }
   0x7   :  { %s892_s22 = smov 0   ;;  %s894_s23 = smov 0  }
   0x8   :  { %s896_s24 = smov 0   ;;  %s898_s25 = smov 0  }
   0x9 LB: > { %s561_s26 = sadd.s32 4294967295, %s844_s25   ;;  %s562_s27 = sadd.s32 4294967294, %s844_s25   ;;  %s844_s25 = sphi %s898_s25, %s24_s25   ;;  %s840_s24 = sphi %s896_s24, %s1109_s24   ;;  %s836_s23 = sphi %s894_s23, %s1108_s23   ;;  %s832_s22 = sphi %s892_s22, %s1107_s22   ;;  %s828_s21 = sphi %s890_s21, %s1106_s21   ;;  %s824_s0 = sphi %s888_s0, %s1105_s0  }
   0xa   : > { %p56_p0 = scmp.ne.s32.totalorder %s828_s21, %s824_s0  ;;  %p922_p1 = scmp.eq.s32.totalorder %s561_s26, 0 }
   0xb   : > { %p926_p2 = scmp.eq.s32.totalorder %s561_s26, 1  ;;  %p182_p3 = scmp.eq.s32.totalorder %s562_s27, 1 }
   0xc   : > { %p932_p4 = por %p922_p1, %p56_p0  ;;  %p563_p5 = scmp.ge.s32.totalorder %s844_s25, 1 }
   0xd   : > { %p937_p6 = por %p182_p3, %p56_p0  ;;  %p189_p7 = scmp.lt.s32.totalorder %s844_s25, 3 }
   0xe   : > { %s1092_s30 = scalar_select %p932_p4, 1, 0 }
   0xf   : > { %s1093_s7 = scalar_select %p937_p6, 1, 0 }
  0x10   : > { %p942_p8 = pnand %p563_p5, %p189_p7  ;;  %s846_s9 = smov [#allocation7]  }
  0x11   : > { %s209_s10 = sshll.u32 %s846_s9, 4  ;;  %s36_s12 = sadd.s32 1, %s840_s24  ;;  %s210_s10 = int_to_ptr.vmem [resolvable:$true] %s209_s10 }
  0x12   : > { %p625_p9 = pneg %p942_p8  ;;  %s717_s13 = scalar_lea.vmem %s210_s10, 1024 }
  0x13   : > { %p718_p13 = scmp.ne.s32.totalorder %s210_s10, %s717_s13  ;;  %p725_p5 = scmp.lt.s32.totalorder %s210_s10, %s210_s10 }
  0x14   : > { %p951_p11 = pnand %p625_p9, %p922_p1  ;;  %p726_p7 = scmp.lt.s32.totalorder %s717_s13, %s717_s13 }
  0x16   : > { %p708_p12 = pneg %p951_p11  ;;  %p727_p6 = por %p726_p7, %p725_p5 }
  0x18   : > { %p720_p0 = pnand %p718_p13, %p708_p12 }
  0x1a   : > { %p721_p3 = pneg %p720_p0 }
  0x1c   : > { %p728_p4 = pnand %p727_p6, %p721_p3 }
  0x1e   : > { %731 = shalt.err (!%p728_p4)
}
  0x1f   : > { %s847_s14 = smov 64   ;;  %s848_s15 = smov 4  }
  0x20   : > { %s1096_s4 = sld [smem:[#allocation14_spill]]  ;;  %p38_p6 = scmp.ge.s32.totalorder %s36_s12, 2 }
  0x21   : > { %s43_s18 = sadd.s32 1, %s832_s22  ;;  %p50_p4 = scmp.ne.s32.totalorder %s832_s22, %s828_s21 }
  0x22   : > { %p51_p9 = scmp.eq.s32.totalorder %s844_s25, 0  ;;  %s1111_s12 = smov (%p38_p6, %s36_s12), 0 }
  0x23   : > { %1097 = sst [smem:[#allocation13_spill]] %s1111_s12  ;;  %p975_p13 = por %p926_p2, %p50_p4 }
  0x24   : > { %p969_p12 = por %p51_p9, %p50_p4  ;;  %s40_s26 = ssub.s32 %s840_s24, %s1111_s12 }
  0x25   : > { %p638_p0 = scmp.lt.s32.totalorder %s844_s25, 2  ;;  %s229_s27 = sand.u32 1, %s832_s22  }
  0x26   : > { %628 = dma.hbm_to_vmem [thread:$0]  (!%p951_p11), %s1096_s4, 1024, %s210_s10, [#allocation8], %s847_s14, %s847_s14, %s848_s15  }
  0x27   : > { %p41_p11 = scmp.eq.s32.totalorder %s40_s26, 0  ;;  %s567_s9 = sshll.u32 %s229_s27, 3 }
  0x28   : > { %s568_s11 = sshll.u32 %s840_s24, 7  ;;  %s233_s16 = scalar_lea.vmem [#allocation4], %s567_s9 }
  0x29   : > { %s984_s10 = scalar_select %p41_p11, %s832_s22, %s43_s18  }
  0x2a   : > { %s238_s15 = scalar_lea.hbm %s1081_s1, %s568_s11  ;;  %s240_s17 = sshll.u32 %s233_s16, 4  ;;  %s241_s17 = int_to_ptr.vmem [resolvable:$true] %s240_s17 }
  0x2b   : > { %p992_p2 = pnand %p638_p0, %p969_p12  ;;  %s230_s4 = scalar_lea.sflag [#allocation5], %s229_s27 }
  0x2c   : > { %s745_s26 = scalar_lea.vmem %s241_s17, 128  ;;  %s849_s18 = smov [#allocation4]  }
  0x2d   : > { %p734_p3 = pneg %p992_p2  ;;  %p746_p5 = scmp.ne.s32.totalorder %s241_s17, %s745_s26 }
  0x2e   : > { %s750_s12 = sshll.u32 %s849_s18, 4  ;;  %s751_s12 = int_to_ptr.vmem [resolvable:$false] %s750_s12 }
  0x2f   : > { %p748_p7 = pnand %p746_p5, %p734_p3  ;;  %s752_s11 = scalar_lea.vmem %s751_s12, 256 }
  0x30   : > { %p753_p4 = scmp.lt.s32.totalorder %s241_s17, %s751_s12  ;;  %p754_p9 = scmp.lt.s32.totalorder %s752_s11, %s745_s26 }
  0x31   : > { %p749_p6 = pneg %p748_p7 }
  0x32   : > { %p755_p11 = por %p754_p9, %p753_p4 }
  0x34   : > { %p756_p10 = pnand %p755_p11, %p749_p6 }
  0x36   : > { %759 = shalt.err (!%p756_p10)
}
  0x37   : > { %632 = dma.hbm_to_vmem [thread:$0]  (!%p992_p2), %s238_s15, 128, %s241_s17, %s230_s4  }
  0x38   : > { %249 = sbr.rel (%p942_p8) target bundleno = 602 (0x25a), region = 40  ;;  %s1003_s19 = sand.u32 (!%p942_p8), 1, %s828_s21  }
  0x39   : > { %s570_s27 = sshll.u32 (!%p942_p8), %s1003_s19, 3  ;;  %s252_s9 = scalar_lea.sflag (!%p942_p8), [#allocation5], %s1003_s19 }
  0x3a   : > { %s255_s12 = scalar_lea.vmem (!%p942_p8), [#allocation4], %s570_s27  ;;  %p1101_p12 = scmp.ne.s32.totalorder (!%p942_p8), %s1092_s30, 0 }
  0x3d   : > { %811 = dma.done.wait (%p1101_p12), %s252_s9, 128  }
  0x3e   : > { %813 = vsyncadd (%p1101_p12), %s252_s9, 4294967168 }
  0x3f   : > { %815 = dma.done.wait (%p922_p1), [#allocation8], 1024  }
  0x40   : > { %817 = vsyncadd (%p922_p1), [#allocation8], 4294966272  ;;  %v293_v0 = vld [vmem:[%s255_s12] sm:$0xff]  ;;  %v850_v6 = vmov 0.0   ;;  %v696_v8 = vld [vmem:[#allocation7 + $0x28] sm:$0xff]   ;;  %vm851_vm0 = vmmov 0  }
  0x41   : > { %294 = vadd.xlane.f32.xlu0 %v293_v0  ;;  %v694_v5 = vld [vmem:[#allocation7 + $0x38] sm:$0xff]   ;;  %597 = vmatprep.subr.bf16.mxu0 %v850_v6  ;;  %v695_v7 = vld [vmem:[#allocation7 + $0x30] sm:$0xff]   ;;  %v697_v9 = vld [vmem:[#allocation7 + $0x20] sm:$0xff]   ;;  %s585_s15 = sshll.u32 %s836_s23, 7  ;;  %s288_s16 = scalar_lea.vmem [#allocation9], %s570_s27 }
  0x42   : > { %598 = vmatpush3.bf16.msra.mxu0 %v694_v5  ;;  %613 = vmatprep.mubr.msk.bf16.mxu0 %vm851_vm0, %v850_v6  ;;  %v698_v10 = vld [vmem:[#allocation7 + $0x18] sm:$0xff]   ;;  %v699_v11 = vld [vmem:[#allocation7 + $0x10] sm:$0xff]   ;;  %v700_v12 = vld [vmem:[#allocation7 + $0x8] sm:$0xff]   ;;  %s458_s17 = sshll.u32 %s288_s16, 4  ;;  %s1032_s18 = scalar_lea.hbm %s1086_s6, %s585_s15  ;;  %s1034_s17 = int_to_ptr.vmem [resolvable:$true] %s458_s17 }
  0x43   : > { %599 = vmatprep.subr.bf16.mxu0 %v850_v6  ;;  %v701_v13 = vld [vmem:[#allocation7] sm:$0xff]   ;;  %v573_v23 = vld [vmem:[%s1082_s2] ss:$0 sm:$0xff]  ;;  %s444_s23 = scalar_lea.sflag [#allocation6], %s1003_s19  ;;  %s760_s11 = scalar_lea.vmem %s1034_s17, 128 }
  0x44   : > { %v574_v25 = vld [vmem:[%s1083_s3] ss:$0 sm:$0xff]  ;;  %p761_p1 = scmp.ne.s32.totalorder %s1034_s17, %s760_s11  ;;  %s852_s27 = smov [#allocation9]  }
  0x45   : > { %v575_v29 = vld [vmem:[%s1085_s5] ss:$0 sm:$0xff]  ;;  %s764_s9 = sshll.u32 %s852_s27, 4  ;;  %s765_s9 = int_to_ptr.vmem [resolvable:$false] %s764_s9 }
  0x46   : > { %600 = vmatpush3.bf16.msra.mxu0 %v695_v7  ;;  %p762_p8 = pnand %p761_p1, %p975_p13  ;;  %s766_s12 = scalar_lea.vmem %s765_s9, 256 }
  0x47   : > { %601 = vmatprep.subr.bf16.mxu0 %v850_v6  ;;  %p767_p0 = scmp.lt.s32.totalorder %s1034_s17, %s765_s9  ;;  %p768_p2 = scmp.lt.s32.totalorder %s766_s12, %s760_s11 }
  0x48   : > { %p763_p10 = pneg %p762_p8 }
  0x49   : > { %p769_p3 = por %p768_p2, %p767_p0 }
  0x4a   : > { %602 = vmatpush3.bf16.msra.mxu0 %v696_v8 }
  0x4b   : > { %603 = vmatprep.subr.bf16.mxu0 %v850_v6  ;;  %p770_p5 = pnand %p769_p3, %p763_p10 }
  0x4e   : > { %604 = vmatpush3.bf16.msra.mxu0 %v697_v9 }
  0x4f   : > { %605 = vmatprep.subr.bf16.mxu0 %v850_v6 }
  0x52   : > { %606 = vmatpush3.bf16.msra.mxu0 %v698_v10 }
  0x53   : > { %607 = vmatprep.subr.bf16.mxu0 %v850_v6 }
  0x56   : > { %608 = vmatpush3.bf16.msra.mxu0 %v699_v11 }
  0x57   : > { %609 = vmatprep.subr.bf16.mxu0 %v850_v6 }
  0x5a   : > { %610 = vmatpush3.bf16.msra.mxu0 %v700_v12 }
  0x5b   : > { %611 = vmatprep.subr.bf16.mxu0 %v850_v6 }
  0x5e   : > { %612 = vmatpush3.bf16.msra.mxu0 %v701_v13 }
  0xca   : > { %v295_v1 = vpop.xlane.xlu0 %294 }
  0xcb   : > { %v297_v2 = vmul.f32 0.0078125, %v295_v1 }
  0xcd   : > { %v298_v3 = vsub.f32 %v293_v0, %v297_v2 }
  0xcf   : > { %v299_v4 = vmul.f32 %v298_v3, %v298_v3 }
  0xd1   : > { %300 = vadd.xlane.f32.xlu0 %v299_v4 }
 0x15a   : > { %v301_v14 = vpop.xlane.xlu0 %300 }
 0x15b   : > { %v302_v15 = vmul.f32 0.007874016, %v301_v14 }
 0x15d   : > { %702 = vrsqrt.f32 %v302_v15  ;;  %vm305_vm1 = vcmp.eq.f32.partialorder %v302_v15, inf  ;;  %v308_v18 = vand.u32 2147483648, %v302_v15  ;;  %vm307_vm2 = vcmp.eq.f32.partialorder %v302_v15, 0.0 }
 0x16a   : > { %v703_v16 = vpop.eup %702 }
 0x16b   : > { %v304_v17 = vmul.f32 %v703_v16, %v302_v15 }
 0x16d   : > { %v306_v19 = vsel %vm305_vm1, %v302_v15, %v304_v17 }
 0x16e   : > { %v309_v20 = vsel %vm307_vm2, %v308_v18, %v306_v19 }
 0x16f   : > { %v310_v21 = vadd.f32 1e-06, %v309_v20 }
 0x171   : > { %704 = vrcp.f32 %v310_v21 }
 0x17e   : > { %v705_v22 = vpop.eup %704 }
 0x17f   : > { %v312_v24 = vmul.f32 %v705_v22, %v298_v3 }
 0x181   : > { %v320_v26 = vmul.f32 %v573_v23, %v312_v24 }
 0x183   : > { %v328_v27 = vadd.f32 %v574_v25, %v320_v26 }
 0x185   : > { %v329_v28 = vpack.c.bf16 %v328_v27, %v328_v27 }
 0x187   : > { %614 = vmatmul.mubr.bf16.vlgmr.msra.gmra.mxu0 %v329_v28 }
 0x247   : > { %v435_v30 = vpop.f32.mrf.mxu0 }
 0x248   : > { %v436_v31 = vadd.f32 %v575_v29, %v435_v30 }
 0x249   : > { %v615_v32 = vpop.f32.mrf.mxu0 }
 0x24a   : > { %v441_v33 = vadd.f32 %v436_v31, %v293_v0 }
 0x24b   : > { %v438_v34 = vpop.f32.mrf.mxu0 }
 0x24c   : > { %442 = vst [vmem:[%s288_s16] sm:$0xff] %v441_v33 }
 0x24d   : > { %v616_v35 = vpop.f32.mrf.mxu0 }
 0x24e   : > { %773 = shalt.err (!%p770_p5)
}
 0x24f   : > { %s774_s4 = scalar_lea.hbm %s1032_s18, 128  ;;  %s778_s30 = scalar_lea.hbm %s1086_s6, 256 }
 0x250   : > { %p775_p7 = scmp.ne.s32.totalorder %s1032_s18, %s774_s4  ;;  %p779_p9 = scmp.lt.s32.totalorder %s1032_s18, %s1086_s6 }
 0x251   : > { %p780_p11 = scmp.lt.s32.totalorder %s778_s30, %s774_s4 }
 0x252   : > { %p776_p6 = pnand %p775_p7, %p975_p13 }
 0x253   : > { %p781_p12 = por %p780_p11, %p779_p9 }
 0x254   : > { %p777_p4 = pneg %p776_p6 }
 0x256   : > { %p782_p1 = pnand %p781_p12, %p777_p4 }
 0x258   : > { %785 = shalt.err (!%p782_p1)
}
 0x259   : > { %623 = dma.vmem_to_hbm [thread:$0]  (%p975_p13), %s1034_s17, 128, %s1032_s18, %s444_s23  }
 0x25a PF: > { %s470_s14 = sand.u32 1, %s824_s0   ;;  %p1102_p8 = scmp.ne.s32.totalorder %s1093_s7, 0 }
 0x25b   : > { %p1103_p10 = scmp.ge.s32.totalorder %s844_s25, 2  ;;  %s471_s15 = scalar_lea.sflag [#allocation6], %s470_s14 }
 0x25d   : > { %p634_p0 = pnand %p1103_p10, %p1102_p8 }
 0x25f   : > { %p635_p2 = pneg %p634_p0 }
 0x261   : > { %819 = dma.done.wait (%p635_p2), %s471_s15, 128  }
 0x262   : > { %821 = vsyncadd (%p635_p2), %s471_s15, 4294967168  ;;  %s24_s25 = sadd.s32 1, %s844_s25   ;;  %s1104_s20 = sld [smem:[#allocation13_spill]] }
 0x263   : > { %p21_p3 = scmp.ge.s32.totalorder %s24_s25, 4   ;;  %s1105_s0 = smov %s828_s21 }
 0x264   : > { %s1106_s21 = smov %s832_s22  ;;  %s1107_s22 = smov %s984_s10 }
 0x265   : > { %s1108_s23 = smov %s840_s24  ;;  %23 = sbr.rel (!%p21_p3) target bundleno = 9 (0x9), region = 93 }
 0x268   : > { %s1109_s24 = smov %s1104_s20 }
 0x26a   :  { %476 = vsyncpa [#allocation5], 1 }
 0x26b   :  { %478 = vsyncpa [#allocation5 + $0x1], 1 }
 0x26c   :  { %479 = vsyncpa [#allocation8], 1 }
 0x26d   :  { %480 = vsyncpa [#allocation6], 1 }
 0x26e   :  { %482 = vsyncpa [#allocation6 + $0x1], 1 }

</bundles_post_ra>
